<compile_context>
chip_gen: v7x
topology: tpu7x:2x2x1
jax: 0.10.0
libtpu: 0.0.40
codegen_flags: <defaults>
</compile_context>

<pallas_src>
import jax
import jax.numpy as jnp
from jax.experimental import pallas as pl
from jax.experimental.pallas import tpu as pltpu

# ----------------------------- problem sizes -------------------------------
BATCH = 128        # rows per call (sublane axis) - amortizes launch overhead
HIDDEN = 32        # input features  (contraction axis K)
OUT = 32           # logical output features
OUT_PAD = 128      # lane-dense padded output width (unmasked vector stores)

# Deterministic quantization parameters (what the observers would produce).
# QuantStub default observer -> quint8 affine: range [0, 255], zp in [0, 255].
X_SCALE = 0.05
X_INV_SCALE = 1.0 / X_SCALE
X_ZERO_POINT = 128.0
# Weight: per-tensor symmetric int8 (qint8, [-127, 127]).
W_SCALE = 0.02
OUT_SCALE = X_SCALE * W_SCALE   # single combined post-scale

# Zero-point folded into the clip bounds of the *centered* code.
XC_LO = -X_ZERO_POINT          # = 0   - zp
XC_HI = 255.0 - X_ZERO_POINT   # = 255 - zp


# ------------------------------ Pallas kernel ------------------------------
def quantized_linear_kernel(x_ref, wq_ref, b_ref, o_ref):
    """QuantStub -> quantized Linear -> DeQuantStub, fused.

    x_ref : (BATCH, HIDDEN)   f32   raw input
    wq_ref: (HIDDEN, OUT_PAD) bf16  pre-quantized, pre-transposed weight codes
    b_ref : (1, OUT_PAD)      f32   bias (zero-padded)
    o_ref : (BATCH, OUT_PAD)  f32   dequantized output
    """
    x = x_ref[...]

    # --- QuantStub: per-tensor affine quantize to centered quint8 codes ----
    # clip(round(x/s) + zp, 0, 255) - zp  ==  clip(round(x/s), -zp, 255-zp)
    xc = jnp.clip(jnp.round(x * X_INV_SCALE), XC_LO, XC_HI)
    # |code| <= 128 is exactly representable in bf16.
    xc = xc.astype(jnp.bfloat16)

    # --- quantized Linear: integer-code matmul on the MXU, f32 accumulate --
    acc = jnp.dot(xc, wq_ref[...], preferred_element_type=jnp.float32)

    # --- DeQuantStub: one combined scale + bias add -------------------------
    o_ref[...] = acc * OUT_SCALE + b_ref[...]


# --------------------- host-side (static) weight prep ----------------------
def make_quantized_params(weight, bias):
    """Quantize the static Linear weight once, pre-transposed and lane-padded.

    weight: (OUT, HIDDEN) f32, bias: (OUT,) f32
    returns wq_pad (HIDDEN, OUT_PAD) bf16, b_pad (1, OUT_PAD) f32
    """
    wq = jnp.clip(jnp.round(weight / W_SCALE), -127.0, 127.0)      # int codes
    wq_t = wq.T.astype(jnp.bfloat16)                               # (K, N)
    wq_pad = jnp.zeros((HIDDEN, OUT_PAD), jnp.bfloat16).at[:, :OUT].set(wq_t)
    b_pad = jnp.zeros((1, OUT_PAD), jnp.float32).at[:, :OUT].set(bias)
    return wq_pad, b_pad


# ------------------------------ host wrapper -------------------------------
@jax.jit
def quantized_model_forward(x, wq_pad, b_pad):
    """x: (BATCH, HIDDEN) f32 -> (BATCH, OUT) f32."""
    out_pad = pl.pallas_call(
        quantized_linear_kernel,
        out_shape=jax.ShapeDtypeStruct((BATCH, OUT_PAD), jnp.float32),
        in_specs=[
            pl.BlockSpec(memory_space=pltpu.MemorySpace.VMEM),
            pl.BlockSpec(memory_space=pltpu.MemorySpace.VMEM),
            pl.BlockSpec(memory_space=pltpu.MemorySpace.VMEM),
        ],
        out_specs=pl.BlockSpec(memory_space=pltpu.MemorySpace.VMEM),
    )(x, wq_pad, b_pad)
    return out_pad[:, :OUT]


# ------------------------------ pure-JAX ref -------------------------------
def reference_forward(x, weight, bias):
    xq = jnp.clip(jnp.round(x * X_INV_SCALE) + X_ZERO_POINT, 0.0, 255.0)
    x_dq = (xq - X_ZERO_POINT) * X_SCALE
    wq = jnp.clip(jnp.round(weight / W_SCALE), -127.0, 127.0)
    w_dq = wq * W_SCALE
    return x_dq @ w_dq.T + bias[None, :]


if __name__ == "__main__":
    key = jax.random.PRNGKey(0)
    kx, kw, kb = jax.random.split(key, 3)

    # Deterministic synthetic inputs / parameters.
    # TODO(synk): the wrapped `model` is a constructor argument in the spec;
    # it is instantiated here as a single quantized Linear(32 -> 32).
    x = jax.random.normal(kx, (BATCH, HIDDEN), dtype=jnp.float32)
    weight = jax.random.normal(kw, (OUT, HIDDEN), dtype=jnp.float32) * 0.1
    bias = jax.random.normal(kb, (OUT,), dtype=jnp.float32) * 0.01

    # Static weight quantization (done once, outside the hot path).
    wq_pad, b_pad = make_quantized_params(weight, bias)

    out = quantized_model_forward(x, wq_pad, b_pad)
    out = jax.block_until_ready(out)

    ref = reference_forward(x, weight, bias)
    assert out.shape == (BATCH, OUT)
    assert jnp.allclose(out, ref, atol=1e-4, rtol=1e-4), "mismatch vs reference"

    print("KERNEL_OK")
</pallas_src>

<mosaic_0001>
module attributes {stable_mosaic.version = 11 : i64} {
  func.func @quantized_linear_kernel(%arg0: memref<128x32xf32, #tpu.memory_space<vmem>>, %arg1: memref<32x128xbf16, #tpu.memory_space<vmem>>, %arg2: memref<1x128xf32, #tpu.memory_space<vmem>>, %arg3: memref<128x128xf32, #tpu.memory_space<vmem>>) attributes {dimension_semantics = [], scalar_prefetch = 0 : i64, scratch_operands = 0 : i64, tpu.core_type = #tpu.core_type<tc>} {
    %c0 = arith.constant 0 : index
    %c0_0 = arith.constant 0 : index
    %0 = vector.load %arg0[%c0, %c0_0] : memref<128x32xf32, #tpu.memory_space<vmem>>, vector<128x32xf32>
    %cst = arith.constant 2.000000e+01 : f32
    %1 = vector.broadcast %cst : f32 to vector<128x32xf32>
    %2 = arith.mulf %0, %1 : vector<128x32xf32>
    %3 = math.roundeven %2 : vector<128x32xf32>
    %cst_1 = arith.constant -1.280000e+02 : f32
    %cst_2 = arith.constant 1.270000e+02 : f32
    %4 = vector.broadcast %cst_1 : f32 to vector<128x32xf32>
    %5 = arith.maximumf %4, %3 : vector<128x32xf32>
    %6 = vector.broadcast %cst_2 : f32 to vector<128x32xf32>
    %7 = arith.minimumf %6, %5 : vector<128x32xf32>
    %8 = arith.truncf %7 : vector<128x32xf32> to vector<128x32xbf16>
    %c0_3 = arith.constant 0 : index
    %c0_4 = arith.constant 0 : index
    %9 = vector.load %arg1[%c0_3, %c0_4] : memref<32x128xbf16, #tpu.memory_space<vmem>>, vector<32x128xbf16>
    %cst_5 = arith.constant dense<0.000000e+00> : vector<128x128xf32>
    %10 = tpu.matmul %8, %9, %cst_5 {dimension_numbers = #tpu.dot_dimension_numbers<[1], [0], [0], [1], [0, 0, 1, 1], [], []>} : vector<128x32xbf16>, vector<32x128xbf16>, vector<128x128xf32> -> vector<128x128xf32>
    %cst_6 = arith.constant 1.000000e-03 : f32
    %11 = vector.broadcast %cst_6 : f32 to vector<128x128xf32>
    %12 = arith.mulf %10, %11 : vector<128x128xf32>
    %c0_7 = arith.constant 0 : index
    %c0_8 = arith.constant 0 : index
    %13 = vector.load %arg2[%c0_7, %c0_8] : memref<1x128xf32, #tpu.memory_space<vmem>>, vector<1x128xf32>
    %14 = vector.broadcast %13 : vector<1x128xf32> to vector<128x128xf32>
    %15 = arith.addf %12, %14 : vector<128x128xf32>
    %c0_9 = arith.constant 0 : index
    %c0_10 = arith.constant 0 : index
    %16 = vector.load %arg3[%c0_9, %c0_10] : memref<128x128xf32, #tpu.memory_space<vmem>>, vector<128x128xf32>
    tpu.vector_store %arg3[%c0_9, %c0_10], %15 {strides = array<i32>} : memref<128x128xf32, #tpu.memory_space<vmem>>, vector<128x128xf32>,
    return
  }
}

</mosaic_0001>

<bundles_post_ra>
// kernel: quantized_model_forward.1
= control target key start
LH: loop header
LB: loop body
LE: loop exit
PB: predicated region body
PF: predicated region fallthrough
CT: control target
= control target key end

     0   :  { %vm119_vm0 = vcmask 261120   ;;  %s496_s1 = inlined_call_operand.vmem [shape: bf16[32,128], index: 1, kind: input, shape index: {}]   ;;  %s497_s0 = inlined_call_operand.vmem [shape: f32[128,32], index: 0, kind: input, shape index: {}]   ;;  %s498_s2 = inlined_call_operand.vmem [shape: f32[1,128], index: 2, kind: input, shape index: {}]   ;;  %s499_s3 = inlined_call_operand.vmem [shape: f32[128,128], index: 3, kind: output, shape index: {}]  }
   0x1   :  { %v361_v0 = vld [vmem:[%s496_s1] sm:$0xff]   ;;  %v362_v1 = vld [vmem:[%s496_s1 + $0x8] sm:$0xff]   ;;  %v17_v9 = vld [vmem:[%s497_s0 + $0x10] sm:$0xff] }
   0x2   :  { %321 = vmatprep.subr.bf16.mxu0 %v361_v0  ;;  %341 = vmatprep.subr.bf16.mxu1 %v361_v0  ;;  %v15_v2 = vld [vmem:[%s497_s0] sm:$0xff]  ;;  %v16_v3 = vld [vmem:[%s497_s0 + $0x8] sm:$0xff]  ;;  %v18_v10 = vld [vmem:[%s497_s0 + $0x18] sm:$0xff]  ;;  %v33_v12 = vmul.f32 20.0, %v17_v9 }
   0x3   :  { %v23_v4 = vld [vmem:[%s497_s0 + $0x40] sm:$0xff]  ;;  %322 = vmatpush3.bf16.msra.mxu0 %v361_v0  ;;  %343 = vmatpush3.bf16.msra.mxu1 %v361_v0  ;;  %v31_v5 = vmul.f32 20.0, %v15_v2  ;;  %v32_v6 = vmul.f32 20.0, %v16_v3  ;;  %v24_v7 = vld [vmem:[%s497_s0 + $0x48] sm:$0xff]  ;;  %v34_v13 = vmul.f32 20.0, %v18_v10  ;;  %v25_v14 = vld [vmem:[%s497_s0 + $0x50] sm:$0xff] }
   0x4   :  { %v39_v8 = vmul.f32 20.0, %v23_v4  ;;  %323 = vmatprep.subr.bf16.mxu0 %v362_v1  ;;  %342 = vmatprep.subr.bf16.mxu1 %v362_v1  ;;  %v40_v11 = vmul.f32 20.0, %v24_v7  ;;  %v26_v15 = vld [vmem:[%s497_s0 + $0x58] sm:$0xff]  ;;  %v41_v19 = vmul.f32 20.0, %v25_v14  ;;  %v347_v21 = vround.rtne.f32 %v33_v12  ;;  %v19_v32 = vld [vmem:[%s497_s0 + $0x20] sm:$0xff]  ;;  %v20_v33 = vld [vmem:[%s497_s0 + $0x28] sm:$0xff] }
   0x5   :  { %v345_v16 = vround.rtne.f32 %v31_v5  ;;  %v346_v17 = vround.rtne.f32 %v32_v6  ;;  %v348_v22 = vround.rtne.f32 %v34_v13  ;;  %v42_v23 = vmul.f32 20.0, %v26_v15  ;;  %v27_v38 = vld [vmem:[%s497_s0 + $0x60] sm:$0xff]  ;;  %v28_v43 = vld [vmem:[%s497_s0 + $0x68] sm:$0xff]  ;;  %v21_v44 = vld [vmem:[%s497_s0 + $0x30] sm:$0xff] }
   0x6   :  { %v353_v18 = vround.rtne.f32 %v39_v8  ;;  %v354_v20 = vround.rtne.f32 %v40_v11  ;;  %v355_v27 = vround.rtne.f32 %v41_v19  ;;  %v65_v29 = vmax.f32 %v347_v21, -128.0  ;;  %v22_v49 = vld [vmem:[%s497_s0 + $0x38] sm:$0xff]  ;;  %v29_v50 = vld [vmem:[%s497_s0 + $0x70] sm:$0xff] }
   0x7   :  { %324 = vmatpush3.bf16.msra.mxu0 %v362_v1  ;;  %344 = vmatpush3.bf16.msra.mxu1 %v362_v1  ;;  %v63_v24 = vmax.f32 %v345_v16, -128.0  ;;  %v64_v25 = vmax.f32 %v346_v17, -128.0  ;;  %v66_v30 = vmax.f32 %v348_v22, -128.0  ;;  %v356_v31 = vround.rtne.f32 %v42_v23  ;;  %v30_v59 = vld [vmem:[%s497_s0 + $0x78] sm:$0xff] }
   0x8   :  { %v71_v26 = vmax.f32 %v353_v18, -128.0  ;;  %v72_v28 = vmax.f32 %v354_v20, -128.0  ;;  %v73_v37 = vmax.f32 %v355_v27, -128.0  ;;  %v81_v40 = vmin.f32 %v65_v29, 127.0  ;;  %v310_v27 = vld [vmem:[%s498_s2] ss:$0 sm:$0xff] }
   0x9   :  { %v79_v34 = vmin.f32 %v63_v24, 127.0  ;;  %v80_v35 = vmin.f32 %v64_v25, 127.0  ;;  %v82_v41 = vmin.f32 %v66_v30, 127.0  ;;  %v74_v42 = vmax.f32 %v356_v31, -128.0 }
   0xa   :  { %v87_v36 = vmin.f32 %v71_v26, 127.0  ;;  %v88_v39 = vmin.f32 %v72_v28, 127.0  ;;  %v89_v46 = vmin.f32 %v73_v37, 127.0  ;;  %v35_v47 = vmul.f32 20.0, %v19_v32 }
   0xb   :  { %v95_v45 = vpack.c.bf16 %v80_v35, %v79_v34  ;;  %v36_v48 = vmul.f32 20.0, %v20_v33  ;;  %v96_v52 = vpack.c.bf16 %v82_v41, %v81_v40  ;;  %v90_v53 = vmin.f32 %v74_v42, 127.0 }
   0xc   :  { %v99_v51 = vpack.c.bf16 %v88_v39, %v87_v36  ;;  %v43_v54 = vmul.f32 20.0, %v27_v38  ;;  %v349_v55 = vround.rtne.f32 %v35_v47  ;;  %v44_v57 = vmul.f32 20.0, %v28_v43 }
   0xd   :  { %325 = vmatprep.mubr.msk.bf16.mxu0 %vm119_vm0, %v95_v45  ;;  %v350_v56 = vround.rtne.f32 %v36_v48  ;;  %v37_v58 = vmul.f32 20.0, %v21_v44  ;;  %v100_v60 = vpack.c.bf16 %v90_v53, %v89_v46  ;;  %v38_v62 = vmul.f32 20.0, %v22_v49 }
   0xe   :  { %333 = vmatprep.mubr.msk.bf16.mxu1 %vm119_vm0, %v99_v51  ;;  %326 = vmatmul.mubr.msk.bf16.vlgmr.msra.gmra.mrb[0].mxu0 %vm119_vm0, %v96_v52  ;;  %v357_v61 = vround.rtne.f32 %v43_v54  ;;  %v45_v63 = vmul.f32 20.0, %v29_v50  ;;  %v67_v0 = vmax.f32 %v349_v55, -128.0  ;;  %v358_v2 = vround.rtne.f32 %v44_v57 }
   0xf   :  { %v68_v1 = vmax.f32 %v350_v56, -128.0  ;;  %v351_v3 = vround.rtne.f32 %v37_v58  ;;  %334 = vmatmul.mubr.msk.bf16.vlgmr.msra.gmra.mrb[0].mxu1 %vm119_vm0, %v100_v60  ;;  %v352_v5 = vround.rtne.f32 %v38_v62  ;;  %v46_v6 = vmul.f32 20.0, %v30_v59 }
  0x10   :  { %v75_v4 = vmax.f32 %v357_v61, -128.0  ;;  %v359_v7 = vround.rtne.f32 %v45_v63  ;;  %v83_v8 = vmin.f32 %v67_v0, 127.0  ;;  %v76_v10 = vmax.f32 %v358_v2, -128.0 }
  0x11   :  { %v84_v9 = vmin.f32 %v68_v1, 127.0  ;;  %v69_v11 = vmax.f32 %v351_v3, -128.0  ;;  %v70_v13 = vmax.f32 %v352_v5, -128.0  ;;  %v360_v14 = vround.rtne.f32 %v46_v6 }
  0x12   :  { %v91_v12 = vmin.f32 %v75_v4, 127.0  ;;  %v77_v15 = vmax.f32 %v359_v7, -128.0  ;;  %v92_v17 = vmin.f32 %v76_v10, 127.0 }
  0x13   :  { %v97_v16 = vpack.c.bf16 %v84_v9, %v83_v8  ;;  %v85_v18 = vmin.f32 %v69_v11, 127.0  ;;  %v86_v19 = vmin.f32 %v70_v13, 127.0  ;;  %v78_v20 = vmax.f32 %v360_v14, -128.0 }
  0x14   :  { %v93_v21 = vmin.f32 %v77_v15, 127.0  ;;  %v101_v22 = vpack.c.bf16 %v92_v17, %v91_v12 }
  0x15   :  { %329 = vmatprep.mubr.msk.bf16.mxu0 %vm119_vm0, %v97_v16  ;;  %v98_v23 = vpack.c.bf16 %v86_v19, %v85_v18  ;;  %v94_v24 = vmin.f32 %v78_v20, 127.0 }
  0x16   :  { %337 = vmatprep.mubr.msk.bf16.mxu1 %vm119_vm0, %v101_v22 }
  0x17   :  { %330 = vmatmul.mubr.msk.bf16.gmra.mrb[4].mxu0 %vm119_vm0, %v98_v23  ;;  %v102_v25 = vpack.c.bf16 %v94_v24, %v93_v21 }
  0x19   :  { %338 = vmatmul.mubr.msk.bf16.gmra.mrb[4].mxu1 %vm119_vm0, %v102_v25 }
  0xe1   :  { %v327_v26 = vpop.f32.mrb[0].mxu0 }
  0xe2   :  { %v243_v28 = vmul.f32 0.001, %v327_v26  ;;  %v178_v29 = vpop.f32.mrb[1].mxu0  ;;  %v335_v30 = vpop.f32.mrb[0].mxu1 }
  0xe3   :  { %v241_v31 = vmul.f32 0.001, %v178_v29  ;;  %v328_v32 = vpop.f32.mrb[2].mxu0  ;;  %v251_v34 = vmul.f32 0.001, %v335_v30  ;;  %v210_v35 = vpop.f32.mrb[1].mxu1 }
  0xe4   :  { %v266_v33 = vadd.f32 %v310_v27, %v243_v28  ;;  %v244_v36 = vmul.f32 0.001, %v328_v32  ;;  %v181_v37 = vpop.f32.mrb[3].mxu0  ;;  %v249_v39 = vmul.f32 0.001, %v210_v35  ;;  %v336_v40 = vpop.f32.mrb[2].mxu1 }
  0xe5   :  { %v264_v38 = vadd.f32 %v310_v27, %v241_v31  ;;  %v242_v41 = vmul.f32 0.001, %v181_v37  ;;  %v274_v42 = vadd.f32 %v310_v27, %v251_v34  ;;  %v252_v44 = vmul.f32 0.001, %v336_v40  ;;  %v213_v45 = vpop.f32.mrb[3].mxu1 }
  0xe6   :  { %282 = vst [vmem:[%s499_s3 + $0x10] sm:$0xff] %v266_v33  ;;  %v267_v43 = vadd.f32 %v310_v27, %v244_v36  ;;  %v272_v46 = vadd.f32 %v310_v27, %v249_v39  ;;  %v250_v48 = vmul.f32 0.001, %v213_v45 }
  0xe7   :  { %280 = vst [vmem:[%s499_s3] sm:$0xff] %v264_v38  ;;  %v265_v47 = vadd.f32 %v310_v27, %v242_v41  ;;  %290 = vst [vmem:[%s499_s3 + $0x50] sm:$0xff] %v274_v42  ;;  %v275_v49 = vadd.f32 %v310_v27, %v252_v44 }
  0xe8   :  { %283 = vst [vmem:[%s499_s3 + $0x18] sm:$0xff] %v267_v43  ;;  %288 = vst [vmem:[%s499_s3 + $0x40] sm:$0xff] %v272_v46  ;;  %v273_v50 = vadd.f32 %v310_v27, %v250_v48 }
  0xe9   :  { %281 = vst [vmem:[%s499_s3 + $0x8] sm:$0xff] %v265_v47  ;;  %291 = vst [vmem:[%s499_s3 + $0x58] sm:$0xff] %v275_v49 }
  0xea   :  { %289 = vst [vmem:[%s499_s3 + $0x48] sm:$0xff] %v273_v50  ;;  %v331_v51 = vpop.f32.mrb[4].mxu0 }
  0xeb   :  { %v247_v52 = vmul.f32 0.001, %v331_v51  ;;  %v194_v53 = vpop.f32.mrb[5].mxu0 }
  0xec   :  { %v339_v54 = vpop.f32.mrb[4].mxu1  ;;  %v245_v55 = vmul.f32 0.001, %v194_v53  ;;  %v332_v56 = vpop.f32.mrb[6].mxu0 }
  0xed   :  { %v270_v57 = vadd.f32 %v310_v27, %v247_v52  ;;  %v255_v58 = vmul.f32 0.001, %v339_v54  ;;  %v226_v59 = vpop.f32.mrb[5].mxu1  ;;  %v248_v60 = vmul.f32 0.001, %v332_v56  ;;  %v197_v61 = vpop.f32.mrb[7].mxu0 }
  0xee   :  { %v268_v62 = vadd.f32 %v310_v27, %v245_v55  ;;  %v253_v63 = vmul.f32 0.001, %v226_v59  ;;  %v340_v0 = vpop.f32.mrb[6].mxu1  ;;  %v246_v1 = vmul.f32 0.001, %v197_v61 }
  0xef   :  { %286 = vst [vmem:[%s499_s3 + $0x30] sm:$0xff] %v270_v57  ;;  %v278_v2 = vadd.f32 %v310_v27, %v255_v58  ;;  %v271_v3 = vadd.f32 %v310_v27, %v248_v60  ;;  %v256_v4 = vmul.f32 0.001, %v340_v0  ;;  %v229_v5 = vpop.f32.mrb[7].mxu1 }
  0xf0   :  { %284 = vst [vmem:[%s499_s3 + $0x20] sm:$0xff] %v268_v62  ;;  %v276_v6 = vadd.f32 %v310_v27, %v253_v63  ;;  %v269_v7 = vadd.f32 %v310_v27, %v246_v1  ;;  %v254_v8 = vmul.f32 0.001, %v229_v5 }
  0xf1   :  { %294 = vst [vmem:[%s499_s3 + $0x70] sm:$0xff] %v278_v2  ;;  %287 = vst [vmem:[%s499_s3 + $0x38] sm:$0xff] %v271_v3  ;;  %v279_v9 = vadd.f32 %v310_v27, %v256_v4 }
  0xf2   :  { %292 = vst [vmem:[%s499_s3 + $0x60] sm:$0xff] %v276_v6  ;;  %285 = vst [vmem:[%s499_s3 + $0x28] sm:$0xff] %v269_v7  ;;  %v277_v10 = vadd.f32 %v310_v27, %v254_v8 }
  0xf3   :  { %295 = vst [vmem:[%s499_s3 + $0x78] sm:$0xff] %v279_v9 }
  0xf4   :  { %293 = vst [vmem:[%s499_s3 + $0x68] sm:$0xff] %v277_v10 }

</bundles_post_ra>
